<compile_context>
chip_gen: v6e
topology: v6e:2x2x1
jax: 0.10.0
libtpu: 0.0.40
codegen_flags: <defaults>
</compile_context>

<pallas_src>
import jax
import jax.numpy as jnp
import numpy as np
from jax.experimental import pallas as pl
from jax.experimental.pallas import tpu as pltpu


def lstm_kernel(x_ref, wih_ref, whh_ref, b_ref, wlin_ref, blin_ref, out_ref):
    seq_len = x_ref.shape[0]          # static Python int
    H = whh_ref.shape[0]

    # ---- Off-critical-path work, hoisted ahead of the recurrence ----------
    # Input projection for ALL timesteps with one bf16 MXU matmul (f32 acc):
    # (S, I) @ (I, 4H) + b -> (S, 4H).
    xw = (jnp.dot(x_ref[...].astype(jnp.bfloat16), wih_ref[...],
                  preferred_element_type=jnp.float32)
          + b_ref[...])
    # Pre-extract the per-step rows: they depend only on xw (not on h), so
    # the sublane selects run off the serial chain.
    xw_rows = [xw[t:t + 1, :] for t in range(seq_len)]

    whh = whh_ref[...]                # (H, 4H) bf16, loaded once; the
                                      # loop-invariant MXU RHS push is hoisted.

    h = jnp.zeros((1, H), jnp.float32)
    c = jnp.zeros((1, H), jnp.float32)

    # ---- Serial recurrence (fully unrolled; seq_len is small and static) --
    # Per-step critical path: one bf16 (1,H)@(H,4H) MXU matmul (f32 acc),
    # one full-vreg sigmoid + one full-vreg tanh on the EUP, VPU cell update.
    # TODO(synk): for seq_len >~ 64 switch to lax.fori_loop(unroll=4..8)
    # carrying (h, c) and reading xw rows via pl.ds to bound vreg pressure.
    for t in range(seq_len):
        gates = xw_rows[t] + jnp.dot(h.astype(jnp.bfloat16), whh,
                                     preferred_element_type=jnp.float32)
        sig = jax.nn.sigmoid(gates)       # one EUP pass over the whole (1,4H)
        tnh = jnp.tanh(gates)             # one EUP pass over the whole (1,4H)
        i_g = sig[:, 0 * H:1 * H]
        f_g = sig[:, 1 * H:2 * H]
        g_g = tnh[:, 2 * H:3 * H]
        o_g = sig[:, 3 * H:4 * H]
        c = f_g * c + i_g * g_g
        h = o_g * jnp.tanh(c)

    # ---- Linear head once, on the last hidden state (== predictions[-1]) --
    # VPU multiply + lane reduce instead of a 1-column MXU matmul.
    out_ref[...] = (jnp.sum(h * wlin_ref[...], axis=-1, keepdims=True)
                    + blin_ref[...])


def lstm_model_forward(x, w_ih, w_hh, b_ih, b_hh, w_lin, b_lin):
    """x: (seq_len, input_size) f32.  Returns (output_size,) f32."""
    seq_len, input_size = x.shape
    hidden = w_hh.shape[1]
    output_size = w_lin.shape[0]

    # Matmul weights go in as bf16 (native MXU operand dtype on all three
    # generations); bias / head weights stay f32, gate math is f32 in-kernel.
    w_ih_t = jnp.asarray(w_ih.T, jnp.bfloat16)              # (I, 4H)
    w_hh_t = jnp.asarray(w_hh.T, jnp.bfloat16)              # (H, 4H)
    b = jnp.asarray((b_ih + b_hh)[None, :], jnp.float32)    # (1, 4H)
    w_lin_r = jnp.asarray(w_lin, jnp.float32)               # (O, H)
    b_lin2 = jnp.asarray(b_lin[:, None], jnp.float32)       # (O, 1)

    # Single invocation (no grid): every operand lives whole in VMEM.
    # VMEM scaling (generation-specific): W_hh_T dominates at 8*H^2 bytes in
    # bf16 -> H=2048 is 32 MiB, fine on v5e/v6e's 128 MiB (raise
    # vmem_limit_bytes above the 16/32 MiB defaults) but right at v7x's
    # 32 MiB default scoped limit / 64 MiB physical VMEM; beyond that, tile
    # the 4H output dim with a nested emit_pipeline instead of whole-array
    # residency.
    in_specs = [pl.BlockSpec(memory_space=pltpu.MemorySpace.VMEM)
                for _ in range(6)]

    out = pl.pallas_call(
        lstm_kernel,
        out_shape=jax.ShapeDtypeStruct((output_size, 1), jnp.float32),
        in_specs=in_specs,
        out_specs=pl.BlockSpec(memory_space=pltpu.MemorySpace.VMEM),
    )(x.astype(jnp.float32), w_ih_t, w_hh_t, b, w_lin_r, b_lin2)

    return out[:, 0]


def lstm_model_reference(x, w_ih, w_hh, b_ih, b_hh, w_lin, b_lin):
    """Pure-JAX f32 reference matching torch.nn.LSTM + Linear semantics."""
    H = w_hh.shape[1]

    def step(carry, x_t):
        h, c = carry
        gates = x_t @ w_ih.T + b_ih + h @ w_hh.T + b_hh
        i = jax.nn.sigmoid(gates[0 * H:1 * H])
        f = jax.nn.sigmoid(gates[1 * H:2 * H])
        g = jnp.tanh(gates[2 * H:3 * H])
        o = jax.nn.sigmoid(gates[3 * H:4 * H])
        c = f * c + i * g
        h = o * jnp.tanh(c)
        return (h, c), h

    h0 = jnp.zeros((H,), jnp.float32)
    c0 = jnp.zeros((H,), jnp.float32)
    (_, _), hs = jax.lax.scan(step, (h0, c0), x)
    preds = hs @ w_lin.T + b_lin
    return preds[-1]


if __name__ == "__main__":
    seq_len = 8
    input_size = 4
    hidden = 32
    output_size = 1

    key = jax.random.PRNGKey(0)
    ks = jax.random.split(key, 7)
    bound = 1.0 / np.sqrt(hidden)   # PyTorch default uniform init bound
    x = jax.random.normal(ks[0], (seq_len, input_size), jnp.float32)
    w_ih = jax.random.uniform(ks[1], (4 * hidden, input_size), jnp.float32,
                              -bound, bound)
    w_hh = jax.random.uniform(ks[2], (4 * hidden, hidden), jnp.float32,
                              -bound, bound)
    b_ih = jax.random.uniform(ks[3], (4 * hidden,), jnp.float32, -bound, bound)
    b_hh = jax.random.uniform(ks[4], (4 * hidden,), jnp.float32, -bound, bound)
    w_lin = jax.random.uniform(ks[5], (output_size, hidden), jnp.float32,
                               -bound, bound)
    b_lin = jax.random.uniform(ks[6], (output_size,), jnp.float32,
                               -bound, bound)

    out = lstm_model_forward(x, w_ih, w_hh, b_ih, b_hh, w_lin, b_lin)
    out = jax.block_until_ready(out)

    ref = lstm_model_reference(x, w_ih, w_hh, b_ih, b_hh, w_lin, b_lin)
    # bf16 MXU operands (f32 accumulate) -> relaxed tolerance vs. f32 ref.
    np.testing.assert_allclose(np.asarray(out), np.asarray(ref),
                               rtol=2e-2, atol=2e-2)

    print("KERNEL_OK")
</pallas_src>

<mosaic_0001>
module attributes {stable_mosaic.version = 11 : i64} {
  func.func @lstm_kernel(%arg0: memref<8x4xf32, #tpu.memory_space<vmem>>, %arg1: memref<4x128xbf16, #tpu.memory_space<vmem>>, %arg2: memref<32x128xbf16, #tpu.memory_space<vmem>>, %arg3: memref<1x128xf32, #tpu.memory_space<vmem>>, %arg4: memref<1x32xf32, #tpu.memory_space<vmem>>, %arg5: memref<1x1xf32, #tpu.memory_space<vmem>>, %arg6: memref<1x1xf32, #tpu.memory_space<vmem>>) attributes {dimension_semantics = [], scalar_prefetch = 0 : i64, scratch_operands = 0 : i64, tpu.core_type = #tpu.core_type<tc>} {
    %c0 = arith.constant 0 : index
    %c0_0 = arith.constant 0 : index
    %0 = vector.load %arg0[%c0, %c0_0] : memref<8x4xf32, #tpu.memory_space<vmem>>, vector<8x4xf32>
    %1 = arith.truncf %0 : vector<8x4xf32> to vector<8x4xbf16>
    %c0_1 = arith.constant 0 : index
    %c0_2 = arith.constant 0 : index
    %2 = vector.load %arg1[%c0_1, %c0_2] : memref<4x128xbf16, #tpu.memory_space<vmem>>, vector<4x128xbf16>
    %cst = arith.constant dense<0.000000e+00> : vector<8x128xf32>
    %3 = tpu.matmul %1, %2, %cst {dimension_numbers = #tpu.dot_dimension_numbers<[1], [0], [0], [1], [0, 0, 1, 1], [], []>} : vector<8x4xbf16>, vector<4x128xbf16>, vector<8x128xf32> -> vector<8x128xf32>
    %c0_3 = arith.constant 0 : index
    %c0_4 = arith.constant 0 : index
    %4 = vector.load %arg3[%c0_3, %c0_4] : memref<1x128xf32, #tpu.memory_space<vmem>>, vector<1x128xf32>
    %5 = vector.broadcast %4 : vector<1x128xf32> to vector<8x128xf32>
    %6 = arith.addf %3, %5 : vector<8x128xf32>
    %7 = vector.extract_strided_slice %6 {offsets = [0, 0], sizes = [1, 128], strides = [1, 1]} : vector<8x128xf32> to vector<1x128xf32>
    %8 = vector.extract_strided_slice %6 {offsets = [1, 0], sizes = [1, 128], strides = [1, 1]} : vector<8x128xf32> to vector<1x128xf32>
    %9 = vector.extract_strided_slice %6 {offsets = [2, 0], sizes = [1, 128], strides = [1, 1]} : vector<8x128xf32> to vector<1x128xf32>
    %10 = vector.extract_strided_slice %6 {offsets = [3, 0], sizes = [1, 128], strides = [1, 1]} : vector<8x128xf32> to vector<1x128xf32>
    %11 = vector.extract_strided_slice %6 {offsets = [4, 0], sizes = [1, 128], strides = [1, 1]} : vector<8x128xf32> to vector<1x128xf32>
    %12 = vector.extract_strided_slice %6 {offsets = [5, 0], sizes = [1, 128], strides = [1, 1]} : vector<8x128xf32> to vector<1x128xf32>
    %13 = vector.extract_strided_slice %6 {offsets = [6, 0], sizes = [1, 128], strides = [1, 1]} : vector<8x128xf32> to vector<1x128xf32>
    %14 = vector.extract_strided_slice %6 {offsets = [7, 0], sizes = [1, 128], strides = [1, 1]} : vector<8x128xf32> to vector<1x128xf32>
    %c0_5 = arith.constant 0 : index
    %c0_6 = arith.constant 0 : index
    %15 = vector.load %arg2[%c0_5, %c0_6] : memref<32x128xbf16, #tpu.memory_space<vmem>>, vector<32x128xbf16>
    %cst_7 = arith.constant 0.000000e+00 : f32
    %16 = vector.broadcast %cst_7 : f32 to vector<1x32xf32>
    %cst_8 = arith.constant 0.000000e+00 : f32
    %17 = vector.broadcast %cst_8 : f32 to vector<1x32xf32>
    %18 = arith.truncf %16 : vector<1x32xf32> to vector<1x32xbf16>
    %cst_9 = arith.constant dense<0.000000e+00> : vector<1x128xf32>
    %19 = tpu.matmul %18, %15, %cst_9 {dimension_numbers = #tpu.dot_dimension_numbers<[1], [0], [0], [1], [0, 0, 1, 1], [], []>} : vector<1x32xbf16>, vector<32x128xbf16>, vector<1x128xf32> -> vector<1x128xf32>
    %20 = arith.addf %7, %19 : vector<1x128xf32>
    %21 = arith.negf %20 : vector<1x128xf32>
    %22 = math.exp %21 : vector<1x128xf32>
    %cst_10 = arith.constant 1.000000e+00 : f32
    %23 = vector.broadcast %cst_10 : f32 to vector<1x128xf32>
    %24 = arith.addf %23, %22 : vector<1x128xf32>
    %25 = arith.divf %23, %24 : vector<1x128xf32>
    %26 = math.tanh %20 : vector<1x128xf32>
    %27 = vector.extract_strided_slice %25 {offsets = [0, 0], sizes = [1, 32], strides = [1, 1]} : vector<1x128xf32> to vector<1x32xf32>
    %28 = vector.extract_strided_slice %25 {offsets = [0, 32], sizes = [1, 32], strides = [1, 1]} : vector<1x128xf32> to vector<1x32xf32>
    %29 = vector.extract_strided_slice %26 {offsets = [0, 64], sizes = [1, 32], strides = [1, 1]} : vector<1x128xf32> to vector<1x32xf32>
    %30 = vector.extract_strided_slice %25 {offsets = [0, 96], sizes = [1, 32], strides = [1, 1]} : vector<1x128xf32> to vector<1x32xf32>
    %31 = arith.mulf %28, %17 : vector<1x32xf32>
    %32 = arith.mulf %27, %29 : vector<1x32xf32>
    %33 = arith.addf %31, %32 : vector<1x32xf32>
    %34 = math.tanh %33 : vector<1x32xf32>
    %35 = arith.mulf %30, %34 : vector<1x32xf32>
    %36 = arith.truncf %35 : vector<1x32xf32> to vector<1x32xbf16>
    %cst_11 = arith.constant dense<0.000000e+00> : vector<1x128xf32>
    %37 = tpu.matmul %36, %15, %cst_11 {dimension_numbers = #tpu.dot_dimension_numbers<[1], [0], [0], [1], [0, 0, 1, 1], [], []>} : vector<1x32xbf16>, vector<32x128xbf16>, vector<1x128xf32> -> vector<1x128xf32>
    %38 = arith.addf %8, %37 : vector<1x128xf32>
    %39 = arith.negf %38 : vector<1x128xf32>
    %40 = math.exp %39 : vector<1x128xf32>
    %cst_12 = arith.constant 1.000000e+00 : f32
    %41 = vector.broadcast %cst_12 : f32 to vector<1x128xf32>
    %42 = arith.addf %41, %40 : vector<1x128xf32>
    %43 = arith.divf %41, %42 : vector<1x128xf32>
    %44 = math.tanh %38 : vector<1x128xf32>
    %45 = vector.extract_strided_slice %43 {offsets = [0, 0], sizes = [1, 32], strides = [1, 1]} : vector<1x128xf32> to vector<1x32xf32>
    %46 = vector.extract_strided_slice %43 {offsets = [0, 32], sizes = [1, 32], strides = [1, 1]} : vector<1x128xf32> to vector<1x32xf32>
    %47 = vector.extract_strided_slice %44 {offsets = [0, 64], sizes = [1, 32], strides = [1, 1]} : vector<1x128xf32> to vector<1x32xf32>
    %48 = vector.extract_strided_slice %43 {offsets = [0, 96], sizes = [1, 32], strides = [1, 1]} : vector<1x128xf32> to vector<1x32xf32>
    %49 = arith.mulf %46, %33 : vector<1x32xf32>
    %50 = arith.mulf %45, %47 : vector<1x32xf32>
    %51 = arith.addf %49, %50 : vector<1x32xf32>
    %52 = math.tanh %51 : vector<1x32xf32>
    %53 = arith.mulf %48, %52 : vector<1x32xf32>
    %54 = arith.truncf %53 : vector<1x32xf32> to vector<1x32xbf16>
    %cst_13 = arith.constant dense<0.000000e+00> : vector<1x128xf32>
    %55 = tpu.matmul %54, %15, %cst_13 {dimension_numbers = #tpu.dot_dimension_numbers<[1], [0], [0], [1], [0, 0, 1, 1], [], []>} : vector<1x32xbf16>, vector<32x128xbf16>, vector<1x128xf32> -> vector<1x128xf32>
    %56 = arith.addf %9, %55 : vector<1x128xf32>
    %57 = arith.negf %56 : vector<1x128xf32>
    %58 = math.exp %57 : vector<1x128xf32>
    %cst_14 = arith.constant 1.000000e+00 : f32
    %59 = vector.broadcast %cst_14 : f32 to vector<1x128xf32>
    %60 = arith.addf %59, %58 : vector<1x128xf32>
    %61 = arith.divf %59, %60 : vector<1x128xf32>
    %62 = math.tanh %56 : vector<1x128xf32>
    %63 = vector.extract_strided_slice %61 {offsets = [0, 0], sizes = [1, 32], strides = [1, 1]} : vector<1x128xf32> to vector<1x32xf32>
    %64 = vector.extract_strided_slice %61 {offsets = [0, 32], sizes = [1, 32], strides = [1, 1]} : vector<1x128xf32> to vector<1x32xf32>
    %65 = vector.extract_strided_slice %62 {offsets = [0, 64], sizes = [1, 32], strides = [1, 1]} : vector<1x128xf32> to vector<1x32xf32>
    %66 = vector.extract_strided_slice %61 {offsets = [0, 96], sizes = [1, 32], strides = [1, 1]} : vector<1x128xf32> to vector<1x32xf32>
    %67 = arith.mulf %64, %51 : vector<1x32xf32>
    %68 = arith.mulf %63, %65 : vector<1x32xf32>
    %69 = arith.addf %67, %68 : vector<1x32xf32>
    %70 = math.tanh %69 : vector<1x32xf32>
    %71 = arith.mulf %66, %70 : vector<1x32xf32>
    %72 = arith.truncf %71 : vector<1x32xf32> to vector<1x32xbf16>
    %cst_15 = arith.constant dense<0.000000e+00> : vector<1x128xf32>
    %73 = tpu.matmul %72, %15, %cst_15 {dimension_numbers = #tpu.dot_dimension_numbers<[1], [0], [0], [1], [0, 0, 1, 1], [], []>} : vector<1x32xbf16>, vector<32x128xbf16>, vector<1x128xf32> -> vector<1x128xf32>
    %74 = arith.addf %10, %73 : vector<1x128xf32>
    %75 = arith.negf %74 : vector<1x128xf32>
    %76 = math.exp %75 : vector<1x128xf32>
    %cst_16 = arith.constant 1.000000e+00 : f32
    %77 = vector.broadcast %cst_16 : f32 to vector<1x128xf32>
    %78 = arith.addf %77, %76 : vector<1x128xf32>
    %79 = arith.divf %77, %78 : vector<1x128xf32>
    %80 = math.tanh %74 : vector<1x128xf32>
    %81 = vector.extract_strided_slice %79 {offsets = [0, 0], sizes = [1, 32], strides = [1, 1]} : vector<1x128xf32> to vector<1x32xf32>
    %82 = vector.extract_strided_slice %79 {offsets = [0, 32], sizes = [1, 32], strides = [1, 1]} : vector<1x128xf32> to vector<1x32xf32>
    %83 = vector.extract_strided_slice %80 {offsets = [0, 64], sizes = [1, 32], strides = [1, 1]} : vector<1x128xf32> to vector<1x32xf32>
    %84 = vector.extract_strided_slice %79 {offsets = [0, 96], sizes = [1, 32], strides = [1, 1]} : vector<1x128xf32> to vector<1x32xf32>
    %85 = arith.mulf %82, %69 : vector<1x32xf32>
    %86 = arith.mulf %81, %83 : vector<1x32xf32>
    %87 = arith.addf %85, %86 : vector<1x32xf32>
    %88 = math.tanh %87 : vector<1x32xf32>
    %89 = arith.mulf %84, %88 : vector<1x32xf32>
    %90 = arith.truncf %89 : vector<1x32xf32> to vector<1x32xbf16>
    %cst_17 = arith.constant dense<0.000000e+00> : vector<1x128xf32>
    %91 = tpu.matmul %90, %15, %cst_17 {dimension_numbers = #tpu.dot_dimension_numbers<[1], [0], [0], [1], [0, 0, 1, 1], [], []>} : vector<1x32xbf16>, vector<32x128xbf16>, vector<1x128xf32> -> vector<1x128xf32>
    %92 = arith.addf %11, %91 : vector<1x128xf32>
    %93 = arith.negf %92 : vector<1x128xf32>
    %94 = math.exp %93 : vector<1x128xf32>
    %cst_18 = arith.constant 1.000000e+00 : f32
    %95 = vector.broadcast %cst_18 : f32 to vector<1x128xf32>
    %96 = arith.addf %95, %94 : vector<1x128xf32>
    %97 = arith.divf %95, %96 : vector<1x128xf32>
    %98 = math.tanh %92 : vector<1x128xf32>
    %99 = vector.extract_strided_slice %97 {offsets = [0, 0], sizes = [1, 32], strides = [1, 1]} : vector<1x128xf32> to vector<1x32xf32>
    %100 = vector.extract_strided_slice %97 {offsets = [0, 32], sizes = [1, 32], strides = [1, 1]} : vector<1x128xf32> to vector<1x32xf32>
    %101 = vector.extract_strided_slice %98 {offsets = [0, 64], sizes = [1, 32], strides = [1, 1]} : vector<1x128xf32> to vector<1x32xf32>
    %102 = vector.extract_strided_slice %97 {offsets = [0, 96], sizes = [1, 32], strides = [1, 1]} : vector<1x128xf32> to vector<1x32xf32>
    %103 = arith.mulf %100, %87 : vector<1x32xf32>
    %104 = arith.mulf %99, %101 : vector<1x32xf32>
    %105 = arith.addf %103, %104 : vector<1x32xf32>
    %106 = math.tanh %105 : vector<1x32xf32>
    %107 = arith.mulf %102, %106 : vector<1x32xf32>
    %108 = arith.truncf %107 : vector<1x32xf32> to vector<1x32xbf16>
    %cst_19 = arith.constant dense<0.000000e+00> : vector<1x128xf32>
    %109 = tpu.matmul %108, %15, %cst_19 {dimension_numbers = #tpu.dot_dimension_numbers<[1], [0], [0], [1], [0, 0, 1, 1], [], []>} : vector<1x32xbf16>, vector<32x128xbf16>, vector<1x128xf32> -> vector<1x128xf32>
    %110 = arith.addf %12, %109 : vector<1x128xf32>
    %111 = arith.negf %110 : vector<1x128xf32>
    %112 = math.exp %111 : vector<1x128xf32>
    %cst_20 = arith.constant 1.000000e+00 : f32
    %113 = vector.broadcast %cst_20 : f32 to vector<1x128xf32>
    %114 = arith.addf %113, %112 : vector<1x128xf32>
    %115 = arith.divf %113, %114 : vector<1x128xf32>
    %116 = math.tanh %110 : vector<1x128xf32>
    %117 = vector.extract_strided_slice %115 {offsets = [0, 0], sizes = [1, 32], strides = [1, 1]} : vector<1x128xf32> to vector<1x32xf32>
    %118 = vector.extract_strided_slice %115 {offsets = [0, 32], sizes = [1, 32], strides = [1, 1]} : vector<1x128xf32> to vector<1x32xf32>
    %119 = vector.extract_strided_slice %116 {offsets = [0, 64], sizes = [1, 32], strides = [1, 1]} : vector<1x128xf32> to vector<1x32xf32>
    %120 = vector.extract_strided_slice %115 {offsets = [0, 96], sizes = [1, 32], strides = [1, 1]} : vector<1x128xf32> to vector<1x32xf32>
    %121 = arith.mulf %118, %105 : vector<1x32xf32>
    %122 = arith.mulf %117, %119 : vector<1x32xf32>
    %123 = arith.addf %121, %122 : vector<1x32xf32>
    %124 = math.tanh %123 : vector<1x32xf32>
    %125 = arith.mulf %120, %124 : vector<1x32xf32>
    %126 = arith.truncf %125 : vector<1x32xf32> to vector<1x32xbf16>
    %cst_21 = arith.constant dense<0.000000e+00> : vector<1x128xf32>
    %127 = tpu.matmul %126, %15, %cst_21 {dimension_numbers = #tpu.dot_dimension_numbers<[1], [0], [0], [1], [0, 0, 1, 1], [], []>} : vector<1x32xbf16>, vector<32x128xbf16>, vector<1x128xf32> -> vector<1x128xf32>
    %128 = arith.addf %13, %127 : vector<1x128xf32>
    %129 = arith.negf %128 : vector<1x128xf32>
    %130 = math.exp %129 : vector<1x128xf32>
    %cst_22 = arith.constant 1.000000e+00 : f32
    %131 = vector.broadcast %cst_22 : f32 to vector<1x128xf32>
    %132 = arith.addf %131, %130 : vector<1x128xf32>
    %133 = arith.divf %131, %132 : vector<1x128xf32>
    %134 = math.tanh %128 : vector<1x128xf32>
    %135 = vector.extract_strided_slice %133 {offsets = [0, 0], sizes = [1, 32], strides = [1, 1]} : vector<1x128xf32> to vector<1x32xf32>
    %136 = vector.extract_strided_slice %133 {offsets = [0, 32], sizes = [1, 32], strides = [1, 1]} : vector<1x128xf32> to vector<1x32xf32>
    %137 = vector.extract_strided_slice %134 {offsets = [0, 64], sizes = [1, 32], strides = [1, 1]} : vector<1x128xf32> to vector<1x32xf32>
    %138 = vector.extract_strided_slice %133 {offsets = [0, 96], sizes = [1, 32], strides = [1, 1]} : vector<1x128xf32> to vector<1x32xf32>
    %139 = arith.mulf %136, %123 : vector<1x32xf32>
    %140 = arith.mulf %135, %137 : vector<1x32xf32>
    %141 = arith.addf %139, %140 : vector<1x32xf32>
    %142 = math.tanh %141 : vector<1x32xf32>
    %143 = arith.mulf %138, %142 : vector<1x32xf32>
    %144 = arith.truncf %143 : vector<1x32xf32> to vector<1x32xbf16>
    %cst_23 = arith.constant dense<0.000000e+00> : vector<1x128xf32>
    %145 = tpu.matmul %144, %15, %cst_23 {dimension_numbers = #tpu.dot_dimension_numbers<[1], [0], [0], [1], [0, 0, 1, 1], [], []>} : vector<1x32xbf16>, vector<32x128xbf16>, vector<1x128xf32> -> vector<1x128xf32>
    %146 = arith.addf %14, %145 : vector<1x128xf32>
    %147 = arith.negf %146 : vector<1x128xf32>
    %148 = math.exp %147 : vector<1x128xf32>
    %cst_24 = arith.constant 1.000000e+00 : f32
    %149 = vector.broadcast %cst_24 : f32 to vector<1x128xf32>
    %150 = arith.addf %149, %148 : vector<1x128xf32>
    %151 = arith.divf %149, %150 : vector<1x128xf32>
    %152 = math.tanh %146 : vector<1x128xf32>
    %153 = vector.extract_strided_slice %151 {offsets = [0, 0], sizes = [1, 32], strides = [1, 1]} : vector<1x128xf32> to vector<1x32xf32>
    %154 = vector.extract_strided_slice %151 {offsets = [0, 32], sizes = [1, 32], strides = [1, 1]} : vector<1x128xf32> to vector<1x32xf32>
    %155 = vector.extract_strided_slice %152 {offsets = [0, 64], sizes = [1, 32], strides = [1, 1]} : vector<1x128xf32> to vector<1x32xf32>
    %156 = vector.extract_strided_slice %151 {offsets = [0, 96], sizes = [1, 32], strides = [1, 1]} : vector<1x128xf32> to vector<1x32xf32>
    %157 = arith.mulf %154, %141 : vector<1x32xf32>
    %158 = arith.mulf %153, %155 : vector<1x32xf32>
    %159 = arith.addf %157, %158 : vector<1x32xf32>
    %160 = math.tanh %159 : vector<1x32xf32>
    %161 = arith.mulf %156, %160 : vector<1x32xf32>
    %c0_25 = arith.constant 0 : index
    %c0_26 = arith.constant 0 : index
    %162 = vector.load %arg4[%c0_25, %c0_26] : memref<1x32xf32, #tpu.memory_space<vmem>>, vector<1x32xf32>
    %163 = arith.mulf %161, %162 : vector<1x32xf32>
    %cst_27 = arith.constant dense<0.000000e+00> : vector<1xf32>
    %164 = vector.multi_reduction <add>, %163, %cst_27 [1] : vector<1x32xf32> to vector<1xf32>
    %165 = vector.shape_cast %164 : vector<1xf32> to vector<1x1xf32>
    %c0_28 = arith.constant 0 : index
    %c0_29 = arith.constant 0 : index
    %166 = vector.load %arg5[%c0_28, %c0_29] : memref<1x1xf32, #tpu.memory_space<vmem>>, vector<1x1xf32>
    %167 = arith.addf %165, %166 : vector<1x1xf32>
    %c0_30 = arith.constant 0 : index
    %c0_31 = arith.constant 0 : index
    %168 = vector.load %arg6[%c0_30, %c0_31] : memref<1x1xf32, #tpu.memory_space<vmem>>, vector<1x1xf32>
    tpu.vector_store %arg6[%c0_30, %c0_31], %167 {strides = array<i32>} : memref<1x1xf32, #tpu.memory_space<vmem>>, vector<1x1xf32>,
    return
  }
}

</mosaic_0001>

<bundles_post_ra>
// kernel: tpu_custom_call.1
= control target key start
LH: loop header
LB: loop body
LE: loop exit
PB: predicated region body
PF: predicated region fallthrough
CT: control target
= control target key end

     0   :  { %s1188_s0 = inlined_call_operand.vmem [shape: f32[8,4], index: 0, kind: input, shape index: {}]   ;;  %s1189_s1 = inlined_call_operand.hbm [shape: bf16[4,128], index: 1, kind: input, shape index: {}]   ;;  %s1190_s2 = inlined_call_operand.vmem [shape: bf16[32,128], index: 2, kind: input, shape index: {}]   ;;  %s1191_s3 = inlined_call_operand.vmem [shape: f32[1,128], index: 3, kind: input, shape index: {}]   ;;  %s1192_s4 = inlined_call_operand.vmem [shape: f32[1,32], index: 4, kind: input, shape index: {}]   ;;  %s1193_s5 = inlined_call_operand.<no memory space> [shape: f32[1,1], index: 5, kind: input, shape index: {}]   ;;  %s1194_s6 = inlined_call_operand.hbm [shape: f32[1,1], index: 6, kind: output, shape index: {}]  }
   0x1   :  { %v11_v0 = vstv %s1193_s5 }
   0x2   :  { %12 = vst [vmem:[#allocation2] sm:$0x1] %v11_v0 }
   0x3   :  { %13 = vsyncpa [#allocation4], 0 }
   0x4   :  { %14 = vsyncpa [#allocation5], 0  ;;  %s1017_s23 = smov [#allocation3]  }
   0x5   :  { %s23_s24 = sshll.u32 %s1017_s23, 4  ;;  %s24_s24 = int_to_ptr.vmem [resolvable:$true] %s23_s24 }
   0x6   :  { %s981_s25 = scalar_lea.vmem %s24_s24, 32  ;;  %p986_p1 = scmp.lt.s32.totalorder %s24_s24, %s24_s24 }
   0x7   :  { %p982_p0 = scmp.ne.s32.totalorder %s24_s24, %s981_s25  ;;  %p987_p2 = scmp.lt.s32.totalorder %s981_s25, %s981_s25 }
   0x9   :  { %p988_p3 = por %p987_p2, %p986_p1 }
   0xb   :  { %p989_p4 = pnand %p988_p3, %p982_p0 }
   0xd   :  { %992 = shalt.err (!%p989_p4)
}
   0xe   :  { %26 = dma.hbm_to_vmem [thread:$0]  %s1189_s1, 32, %s24_s24, [#allocation4]  }
   0xf   :  { %1013 = dma.done.wait [#allocation4], 32  }
  0x10   :  { %1014 = vsyncadd [#allocation4], 4294967264  ;;  %v1018_v1 = vmov 0.0   ;;  %vm1019_vm0 = vmmov 0   ;;  %vm53_vm1 = vcmask 1041408   ;;  %v1075_v4 = vld [vmem:[%s1190_s2 + $0x8] sm:$0xff]  }
  0x11   :  { %829 = vmatprep.subr.bf16.mxu0 %v1018_v1  ;;  %835 = vmatprep.subr.bf16.mxu1 %v1018_v1  ;;  %v41_v2 = vld [vmem:[#allocation3] sm:$0x3]  ;;  %vm49_vm2 = vcmask 31744   ;;  %v1020_v8 = vmov 0   ;;  %v782_v9 = vld [vmem:[%s1191_s3] ss:$0 sm:$0xff] }
  0x12   :  { %831 = vmatprep.mubr.msk.bf16.mxu0 %vm1019_vm0, %v1018_v1  ;;  %839 = vmatprep.mubr.msk.bf16.mxu1 %vm1019_vm0, %v1018_v1  ;;  %v55_v3 = vsel %vm53_vm1, %v41_v2, 0  ;;  %v39_v5 = vld [vmem:[%s1188_s0] sm:$0xff]  ;;  %s1021_s8 = smov 64   ;;  %s1022_s3 = smov 32   ;;  %vm113_vm3 = vcmask 261120   ;;  %vm753_vm4 = vcmask 261127  }
  0x13   :  { %830 = vmatpush3.bf16.msra.mxu0 %v55_v3  ;;  %v40_v6 = vpack.c.bf16 %v39_v5, %v39_v5  ;;  %836 = vmatpush3.bf16.msra.mxu1 %v1075_v4  ;;  %v1084_v7 = vld [vmem:[%s1190_s2] sm:$0xff]   ;;  %s1023_s11 = smov 96   ;;  %vm765_vm5 = vcmask 7175  }
  0x14   :  { %843 = vmatprep.subr.bf16.mxu0 %v1018_v1  ;;  %837 = vmatprep.subr.bf16.mxu1 %v1018_v1 }
  0x16   :  { %832 = vmatmul.mubr.msk.bf16.vlgmr.msra.gmra.mxu0 %vm49_vm2, %v40_v6 }
  0x17   :  { %844 = vmatpush3.bf16.msra.mxu0 %v1075_v4  ;;  %847 = vmatprep.mubr.msk.bf16.mxu0 %vm1019_vm0, %v1018_v1 }
  0x18   :  { %838 = vmatpush3.bf16.msra.mxu1 %v1084_v7  ;;  %845 = vmatprep.subr.bf16.mxu0 %v1018_v1 }
  0x19   :  { %851 = vmatprep.subr.bf16.mxu1 %v1018_v1 }
  0x1b   :  { %840 = vmatmul.mubr.bf16.vlgmr.msra.gmra.mxu1 %v1020_v8  ;;  %846 = vmatpush3.bf16.msra.mxu0 %v1084_v7 }
  0x1c   :  { %852 = vmatpush3.bf16.msra.mxu1 %v1075_v4  ;;  %855 = vmatprep.mubr.msk.bf16.mxu1 %vm1019_vm0, %v1018_v1 }
  0x1d   :  { %853 = vmatprep.subr.bf16.mxu1 %v1018_v1  ;;  %859 = vmatprep.subr.bf16.mxu0 %v1018_v1 }
  0x20   :  { %854 = vmatpush3.bf16.msra.mxu1 %v1084_v7 }
  0x21   :  { %867 = vmatprep.subr.bf16.mxu1 %v1018_v1 }
  0xd6   :  { %v91_v10 = vpop.f32.mrf.mxu0 }
  0xd7   :  { %v1105_v11 = vadd.f32 %v782_v9, %v91_v10 }
  0xd8   :  { %v833_v12 = vpop.f32.mrf.mxu0 }
  0xda   :  { %v94_v13 = vpop.f32.mrf.mxu0 }
  0xdb   :  { %v151_v14 = vpop.f32.mrf.mxu1 }
  0xdc   :  { %v157_v15 = vadd.f32 %v151_v14, %v1105_v11  ;;  %v834_v16 = vpop.f32.mrf.mxu0 }
  0xdd   :  { %v841_v17 = vpop.f32.mrf.mxu1 }
  0xde   :  { %909 = vtanh.f32 %v157_v15  ;;  %v786_v21 = vmul.f32 -1.442695, %v157_v15 }
  0xdf   :  { %v154_v18 = vpop.f32.mrf.mxu1 }
  0xe0   :  { %911 = vpow2.f32 %v786_v21 }
  0xe1   :  { %v842_v19 = vpop.f32.mrf.mxu1 }
  0xeb   :  { %v910_v20 = vpop.eup %909 }
  0xec   :  { %167 = vrot.lane.b32.xlu0 %v910_v20, %s1021_s8 }
  0xed   :  { %v912_v22 = vpop.eup %911 }
  0xee   :  { %v161_v23 = vadd.f32 1.0, %v912_v22 }
  0xf0   :  { %913 = vrcp.f32 %v161_v23 }
  0xfd   :  { %v914_v24 = vpop.eup %913 }
  0xfe   :  { %v165_v27 = vmul.f32 0.0, %v914_v24 }
 0x15e   :  { %v168_v25 = vpop.permute.xlu0 %167 }
 0x15f   :  { %v170_v26 = vmul.f32 %v914_v24, %v168_v25 }
 0x161   :  { %172 = vrot.lane.b32.xlu0 %v170_v26, %s1022_s3 }
 0x1d3   :  { %v173_v28 = vpop.permute.xlu0 %172 }
 0x1d4   :  { %v175_v29 = vadd.f32 %v173_v28, %v165_v27 }
 0x1d6   :  { %915 = vtanh.f32 %v175_v29  ;;  %v241_v48 = vrot.slane %v175_v29, 7 }
 0x1e3   :  { %v916_v30 = vpop.eup %915 }
 0x1e4   :  { %178 = vrot.lane.b32.xlu1 %v916_v30, %s1021_s8 }
 0x256   :  { %v179_v31 = vpop.permute.xlu1 %178 }
 0x257   :  { %v181_v32 = vmul.f32 %v914_v24, %v179_v31 }
 0x259   :  { %v182_v33 = vpack.c.bf16 %v181_v32, %v181_v32 }
 0x25b   :  { %184 = vrot.lane.b32.xlu1 %v182_v33, %s1022_s3 }
 0x2cd   :  { %v185_v34 = vpop.permute.xlu1 %184 }
 0x2ce   :  { %848 = vmatmul.mubr.msk.bf16.vlgmr.msra.gmra.mxu0 %vm113_vm3, %v185_v34 }
 0x2cf   :  { %860 = vmatpush3.bf16.msra.mxu0 %v1075_v4  ;;  %863 = vmatprep.mubr.msk.bf16.mxu0 %vm1019_vm0, %v1018_v1 }
 0x2d0   :  { %861 = vmatprep.subr.bf16.mxu0 %v1018_v1 }
 0x2d3   :  { %862 = vmatpush3.bf16.msra.mxu0 %v1084_v7 }
 0x2d4   :  { %875 = vmatprep.subr.bf16.mxu0 %v1018_v1 }
 0x38e   :  { %v223_v35 = vpop.f32.mrf.mxu0 }
 0x38f   :  { %v230_v36 = vrot.slane %v223_v35, 7 }
 0x390   :  { %v849_v37 = vpop.f32.mrf.mxu0 }
 0x391   :  { %v232_v38 = vadd.f32 %v230_v36, %v1105_v11 }
 0x392   :  { %v226_v39 = vpop.f32.mrf.mxu0 }
 0x393   :  { %917 = vtanh.f32 %v232_v38  ;;  %v788_v42 = vmul.f32 -1.442695, %v232_v38 }
 0x394   :  { %v850_v40 = vpop.f32.mrf.mxu0 }
 0x395   :  { %919 = vpow2.f32 %v788_v42 }
 0x3a0   :  { %v918_v41 = vpop.eup %917 }
 0x3a1   :  { %245 = vrot.lane.b32.xlu0 %v918_v41, %s1021_s8 }
 0x3a2   :  { %v920_v43 = vpop.eup %919 }
 0x3a3   :  { %v236_v44 = vadd.f32 1.0, %v920_v43 }
 0x3a5   :  { %921 = vrcp.f32 %v236_v44 }
 0x3b2   :  { %v922_v45 = vpop.eup %921 }
 0x3b3   :  { %v243_v49 = vmul.f32 %v922_v45, %v241_v48 }
 0x413   :  { %v246_v46 = vpop.permute.xlu0 %245 }
 0x414   :  { %v248_v47 = vmul.f32 %v922_v45, %v246_v46 }
 0x416   :  { %250 = vrot.lane.b32.xlu1 %v248_v47, %s1022_s3 }
 0x488   :  { %v251_v50 = vpop.permute.xlu1 %250 }
 0x489   :  { %v253_v51 = vadd.f32 %v251_v50, %v243_v49 }
 0x48b   :  { %923 = vtanh.f32 %v253_v51  ;;  %v321_v10 = vrot.slane %v253_v51, 7 }
 0x498   :  { %v924_v52 = vpop.eup %923 }
 0x499   :  { %256 = vrot.lane.b32.xlu0 %v924_v52, %s1021_s8 }
 0x50b   :  { %v257_v53 = vpop.permute.xlu0 %256 }
 0x50c   :  { %v259_v54 = vmul.f32 %v922_v45, %v257_v53 }
 0x50e   :  { %v260_v55 = vpack.c.bf16 %v259_v54, %v259_v54 }
 0x510   :  { %v262_v56 = vshrl.u32 %v260_v55, 16 }
 0x512   :  { %264 = vrot.lane.b32.xlu1 %v262_v56, %s1022_s3 }
 0x584   :  { %v265_v57 = vpop.permute.xlu1 %264 }
 0x585   :  { %856 = vmatmul.mubr.msk.bf16.vlgmr.msra.gmra.mxu1 %vm113_vm3, %v265_v57 }
 0x586   :  { %868 = vmatpush3.bf16.msra.mxu1 %v1075_v4  ;;  %871 = vmatprep.mubr.msk.bf16.mxu1 %vm1019_vm0, %v1018_v1 }
 0x587   :  { %869 = vmatprep.subr.bf16.mxu1 %v1018_v1 }
 0x58a   :  { %870 = vmatpush3.bf16.msra.mxu1 %v1084_v7 }
 0x58b   :  { %883 = vmatprep.subr.bf16.mxu1 %v1018_v1 }
 0x645   :  { %v303_v58 = vpop.f32.mrf.mxu1 }
 0x646   :  { %v310_v59 = vrot.slane %v303_v58, 6 }
 0x647   :  { %v857_v60 = vpop.f32.mrf.mxu1 }
 0x648   :  { %v312_v61 = vadd.f32 %v310_v59, %v1105_v11 }
 0x649   :  { %v306_v62 = vpop.f32.mrf.mxu1 }
 0x64a   :  { %925 = vtanh.f32 %v312_v61  ;;  %v790_v2 = vmul.f32 -1.442695, %v312_v61 }
 0x64b   :  { %v858_v63 = vpop.f32.mrf.mxu1 }
 0x64c   :  { %927 = vpow2.f32 %v790_v2 }
 0x657   :  { %v926_v0 = vpop.eup %925 }
 0x658   :  { %325 = vrot.lane.b32.xlu0 %v926_v0, %s1021_s8 }
 0x659   :  { %v928_v3 = vpop.eup %927 }
 0x65a   :  { %v316_v5 = vadd.f32 1.0, %v928_v3 }
 0x65c   :  { %929 = vrcp.f32 %v316_v5 }
 0x669   :  { %v930_v6 = vpop.eup %929 }
 0x66a   :  { %v323_v12 = vmul.f32 %v930_v6, %v321_v10 }
 0x6ca   :  { %v326_v8 = vpop.permute.xlu0 %325 }
 0x6cb   :  { %v328_v9 = vmul.f32 %v930_v6, %v326_v8 }
 0x6cd   :  { %330 = vrot.lane.b32.xlu1 %v328_v9, %s1022_s3 }
 0x73f   :  { %v331_v13 = vpop.permute.xlu1 %330 }
 0x740   :  { %v333_v14 = vadd.f32 %v331_v13, %v323_v12 }
 0x742   :  { %931 = vtanh.f32 %v333_v14  ;;  %v400_v34 = vrot.slane %v333_v14, 7 }
 0x74f   :  { %v932_v15 = vpop.eup %931 }
 0x750   :  { %336 = vrot.lane.b32.xlu0 %v932_v15, %s1021_s8 }
 0x7c2   :  { %v337_v16 = vpop.permute.xlu0 %336 }
 0x7c3   :  { %v339_v17 = vmul.f32 %v930_v6, %v337_v16 }
 0x7c5   :  { %v340_v18 = vpack.c.bf16 %v339_v17, %v339_v17 }
 0x7c7   :  { %v342_v19 = vrot.slane %v340_v18, 1 }
 0x7c9   :  { %343 = vrot.lane.b32.xlu1 %v342_v19, %s1022_s3 }
 0x83b   :  { %v344_v20 = vpop.permute.xlu1 %343 }
 0x83c   :  { %864 = vmatmul.mubr.msk.bf16.vlgmr.msra.gmra.mxu0 %vm113_vm3, %v344_v20 }
 0x83d   :  { %876 = vmatpush3.bf16.msra.mxu0 %v1075_v4  ;;  %879 = vmatprep.mubr.msk.bf16.mxu0 %vm1019_vm0, %v1018_v1 }
 0x83e   :  { %877 = vmatprep.subr.bf16.mxu0 %v1018_v1 }
 0x841   :  { %878 = vmatpush3.bf16.msra.mxu0 %v1084_v7 }
 0x842   :  { %891 = vmatprep.subr.bf16.mxu0 %v1018_v1 }
 0x8fc   :  { %v382_v21 = vpop.f32.mrf.mxu0 }
 0x8fd   :  { %v389_v22 = vrot.slane %v382_v21, 5 }
 0x8fe   :  { %v865_v23 = vpop.f32.mrf.mxu0 }
 0x8ff   :  { %v391_v24 = vadd.f32 %v389_v22, %v1105_v11 }
 0x900   :  { %v385_v25 = vpop.f32.mrf.mxu0 }
 0x901   :  { %933 = vtanh.f32 %v391_v24  ;;  %v792_v28 = vmul.f32 -1.442695, %v391_v24 }
 0x902   :  { %v866_v26 = vpop.f32.mrf.mxu0 }
 0x903   :  { %935 = vpow2.f32 %v792_v28 }
 0x90e   :  { %v934_v27 = vpop.eup %933 }
 0x90f   :  { %404 = vrot.lane.b32.xlu0 %v934_v27, %s1021_s8 }
 0x910   :  { %v936_v29 = vpop.eup %935 }
 0x911   :  { %v395_v30 = vadd.f32 1.0, %v936_v29 }
 0x913   :  { %937 = vrcp.f32 %v395_v30 }
 0x920   :  { %v938_v31 = vpop.eup %937 }
 0x921   :  { %v402_v35 = vmul.f32 %v938_v31, %v400_v34 }
 0x981   :  { %v405_v32 = vpop.permute.xlu0 %404 }
 0x982   :  { %v407_v33 = vmul.f32 %v938_v31, %v405_v32 }
 0x984   :  { %409 = vrot.lane.b32.xlu1 %v407_v33, %s1022_s3 }
 0x9f6   :  { %v410_v36 = vpop.permute.xlu1 %409 }
 0x9f7   :  { %v412_v37 = vadd.f32 %v410_v36, %v402_v35 }
 0x9f9   :  { %939 = vtanh.f32 %v412_v37  ;;  %v481_v58 = vrot.slane %v412_v37, 7 }
 0xa06   :  { %v940_v38 = vpop.eup %939 }
 0xa07   :  { %415 = vrot.lane.b32.xlu0 %v940_v38, %s1021_s8 }
 0xa79   :  { %v416_v39 = vpop.permute.xlu0 %415 }
 0xa7a   :  { %v418_v40 = vmul.f32 %v938_v31, %v416_v39 }
 0xa7c   :  { %v419_v41 = vpack.c.bf16 %v418_v40, %v418_v40 }
 0xa7e   :  { %v421_v42 = vshrl.u32 %v419_v41, 16 }
 0xa80   :  { %v423_v43 = vrot.slane %v421_v42, 1 }
 0xa82   :  { %424 = vrot.lane.b32.xlu1 %v423_v43, %s1022_s3 }
 0xaf4   :  { %v425_v44 = vpop.permute.xlu1 %424 }
 0xaf5   :  { %872 = vmatmul.mubr.msk.bf16.vlgmr.msra.gmra.mxu1 %vm113_vm3, %v425_v44 }
 0xaf6   :  { %884 = vmatpush3.bf16.msra.mxu1 %v1075_v4  ;;  %887 = vmatprep.mubr.msk.bf16.mxu1 %vm1019_vm0, %v1018_v1 }
 0xaf7   :  { %885 = vmatprep.subr.bf16.mxu1 %v1018_v1 }
 0xafa   :  { %886 = vmatpush3.bf16.msra.mxu1 %v1084_v7 }
 0xbb5   :  { %v463_v45 = vpop.f32.mrf.mxu1 }
 0xbb6   :  { %v470_v46 = vrot.slane %v463_v45, 4 }
 0xbb7   :  { %v873_v47 = vpop.f32.mrf.mxu1 }
 0xbb8   :  { %v472_v48 = vadd.f32 %v470_v46, %v1105_v11 }
 0xbb9   :  { %v466_v49 = vpop.f32.mrf.mxu1 }
 0xbba   :  { %941 = vtanh.f32 %v472_v48  ;;  %v794_v52 = vmul.f32 -1.442695, %v472_v48 }
 0xbbb   :  { %v874_v50 = vpop.f32.mrf.mxu1 }
 0xbbc   :  { %943 = vpow2.f32 %v794_v52 }
 0xbc7   :  { %v942_v51 = vpop.eup %941 }
 0xbc8   :  { %485 = vrot.lane.b32.xlu0 %v942_v51, %s1021_s8 }
 0xbc9   :  { %v944_v53 = vpop.eup %943 }
 0xbca   :  { %v476_v54 = vadd.f32 1.0, %v944_v53 }
 0xbcc   :  { %945 = vrcp.f32 %v476_v54 }
 0xbd9   :  { %v946_v55 = vpop.eup %945 }
 0xbda   :  { %v483_v59 = vmul.f32 %v946_v55, %v481_v58 }
 0xc3a   :  { %v486_v56 = vpop.permute.xlu0 %485 }
 0xc3b   :  { %v488_v57 = vmul.f32 %v946_v55, %v486_v56 }
 0xc3d   :  { %490 = vrot.lane.b32.xlu1 %v488_v57, %s1022_s3 }
 0xcaf   :  { %v491_v60 = vpop.permute.xlu1 %490 }
 0xcb0   :  { %v493_v61 = vadd.f32 %v491_v60, %v483_v59 }
 0xcb2   :  { %947 = vtanh.f32 %v493_v61 }
 0xcbf   :  { %v948_v62 = vpop.eup %947 }
 0xcc0   :  { %496 = vrot.lane.b32.xlu0 %v948_v62, %s1021_s8 }
 0xd32   :  { %v497_v63 = vpop.permute.xlu0 %496 }
 0xd33   :  { %v499_v0 = vmul.f32 %v946_v55, %v497_v63 }
 0xd35   :  { %v500_v2 = vpack.c.bf16 %v499_v0, %v499_v0 }
 0xd37   :  { %v502_v3 = vrot.slane %v500_v2, 2 }
 0xd39   :  { %503 = vrot.lane.b32.xlu1 %v502_v3, %s1022_s3 }
 0xdab   :  { %v504_v5 = vpop.permute.xlu1 %503 }
 0xdac   :  { %880 = vmatmul.mubr.msk.bf16.vlgmr.msra.gmra.mxu0 %vm113_vm3, %v504_v5 }
 0xdad   :  { %892 = vmatpush3.bf16.msra.mxu0 %v1075_v4  ;;  %895 = vmatprep.mubr.msk.bf16.mxu0 %vm1019_vm0, %v1018_v1 }
 0xdae   :  { %893 = vmatprep.subr.bf16.mxu0 %v1018_v1 }
 0xdb1   :  { %894 = vmatpush3.bf16.msra.mxu0 %v1084_v7  ;;  %v560_v7 = vrot.slane %v493_v61, 7 }
 0xe6c   :  { %v542_v6 = vpop.f32.mrf.mxu0 }
 0xe6d   :  { %v549_v8 = vrot.slane %v542_v6, 3 }
 0xe6e   :  { %v881_v9 = vpop.f32.mrf.mxu0 }
 0xe6f   :  { %v551_v10 = vadd.f32 %v549_v8, %v1105_v11 }
 0xe70   :  { %v545_v12 = vpop.f32.mrf.mxu0 }
 0xe71   :  { %949 = vtanh.f32 %v551_v10  ;;  %v796_v15 = vmul.f32 -1.442695, %v551_v10 }
 0xe72   :  { %v882_v13 = vpop.f32.mrf.mxu0 }
 0xe73   :  { %951 = vpow2.f32 %v796_v15 }
 0xe7e   :  { %v950_v14 = vpop.eup %949 }
 0xe7f   :  { %564 = vrot.lane.b32.xlu0 %v950_v14, %s1021_s8 }
 0xe80   :  { %v952_v4 = vpop.eup %951 }
 0xe81   :  { %v555_v16 = vadd.f32 1.0, %v952_v4  ;;  %v802_v4 = vld [vmem:[#allocation2] ss:$0 sm:$0xff] }
 0xe83   :  { %953 = vrcp.f32 %v555_v16 }
 0xe90   :  { %v954_v17 = vpop.eup %953 }
 0xe91   :  { %v562_v19 = vmul.f32 %v954_v17, %v560_v7 }
 0xef1   :  { %v565_v1 = vpop.permute.xlu0 %564 }
 0xef2   :  { %v567_v18 = vmul.f32 %v954_v17, %v565_v1 }
 0xef4   :  { %569 = vrot.lane.b32.xlu1 %v567_v18, %s1022_s3 }
 0xf66   :  { %v570_v20 = vpop.permute.xlu1 %569 }
 0xf67   :  { %v572_v21 = vadd.f32 %v570_v20, %v562_v19 }
 0xf69   :  { %955 = vtanh.f32 %v572_v21  ;;  %v641_v42 = vrot.slane %v572_v21, 7 }
 0xf76   :  { %v956_v22 = vpop.eup %955 }
 0xf77   :  { %575 = vrot.lane.b32.xlu0 %v956_v22, %s1021_s8 }
 0xfe9   :  { %v576_v23 = vpop.permute.xlu0 %575 }
 0xfea   :  { %v578_v24 = vmul.f32 %v954_v17, %v576_v23 }
 0xfec   :  { %v579_v25 = vpack.c.bf16 %v578_v24, %v578_v24 }
 0xfee   :  { %v581_v26 = vshrl.u32 %v579_v25, 16 }
 0xff0   :  { %v583_v27 = vrot.slane %v581_v26, 2 }
 0xff2   :  { %584 = vrot.lane.b32.xlu1 %v583_v27, %s1022_s3 }
0x1064   :  { %v585_v28 = vpop.permute.xlu1 %584 }
0x1065   :  { %888 = vmatmul.mubr.msk.bf16.vlgmr.msra.gmra.mxu1 %vm113_vm3, %v585_v28 }
0x1125   :  { %v623_v29 = vpop.f32.mrf.mxu1 }
0x1126   :  { %v630_v30 = vrot.slane %v623_v29, 2 }
0x1127   :  { %v889_v31 = vpop.f32.mrf.mxu1 }
0x1128   :  { %v632_v32 = vadd.f32 %v630_v30, %v1105_v11 }
0x1129   :  { %v626_v33 = vpop.f32.mrf.mxu1 }
0x112a   :  { %957 = vtanh.f32 %v632_v32  ;;  %v798_v36 = vmul.f32 -1.442695, %v632_v32 }
0x112b   :  { %v890_v34 = vpop.f32.mrf.mxu1 }
0x112c   :  { %959 = vpow2.f32 %v798_v36 }
0x1137   :  { %v958_v35 = vpop.eup %957 }
0x1138   :  { %645 = vrot.lane.b32.xlu0 %v958_v35, %s1021_s8 }
0x1139   :  { %v960_v37 = vpop.eup %959 }
0x113a   :  { %v636_v38 = vadd.f32 1.0, %v960_v37 }
0x113c   :  { %961 = vrcp.f32 %v636_v38 }
0x1149   :  { %v962_v39 = vpop.eup %961 }
0x114a   :  { %v643_v43 = vmul.f32 %v962_v39, %v641_v42 }
0x11aa   :  { %v646_v40 = vpop.permute.xlu0 %645 }
0x11ab   :  { %v648_v41 = vmul.f32 %v962_v39, %v646_v40 }
0x11ad   :  { %650 = vrot.lane.b32.xlu1 %v648_v41, %s1022_s3 }
0x121f   :  { %v651_v44 = vpop.permute.xlu1 %650 }
0x1220   :  { %v653_v45 = vadd.f32 %v651_v44, %v643_v43 }
0x1222   :  { %963 = vtanh.f32 %v653_v45  ;;  %v720_v2 = vrot.slane %v653_v45, 7 }
0x122f   :  { %v964_v46 = vpop.eup %963 }
0x1230   :  { %656 = vrot.lane.b32.xlu0 %v964_v46, %s1021_s8 }
0x12a2   :  { %v657_v47 = vpop.permute.xlu0 %656 }
0x12a3   :  { %v659_v48 = vmul.f32 %v962_v39, %v657_v47 }
0x12a5   :  { %v660_v49 = vpack.c.bf16 %v659_v48, %v659_v48 }
0x12a7   :  { %v662_v50 = vrot.slane %v660_v49, 3 }
0x12a9   :  { %663 = vrot.lane.b32.xlu1 %v662_v50, %s1022_s3 }
0x131b   :  { %v664_v51 = vpop.permute.xlu1 %663 }
0x131c   :  { %896 = vmatmul.mubr.msk.bf16.vlgmr.msra.gmra.mxu0 %vm113_vm3, %v664_v51 }
0x13dc   :  { %v702_v52 = vpop.f32.mrf.mxu0 }
0x13dd   :  { %v709_v53 = vrot.slane %v702_v52, 1 }
0x13de   :  { %v897_v54 = vpop.f32.mrf.mxu0 }
0x13df   :  { %v711_v55 = vadd.f32 %v709_v53, %v1105_v11  ;;  %v801_v11 = vld [vmem:[%s1192_s4] ss:$0 sm:$0xff]  ;;  %s1024_s4 = smov [#allocation6]  }
0x13e0   :  { %v705_v56 = vpop.f32.mrf.mxu0  ;;  %s773_s12 = sshll.u32 %s1024_s4, 4  ;;  %s774_s12 = int_to_ptr.vmem [resolvable:$true] %s773_s12 }
0x13e1   :  { %965 = vtanh.f32 %v711_v55  ;;  %v800_v59 = vmul.f32 -1.442695, %v711_v55  ;;  %s993_s13 = scalar_lea.vmem %s774_s12, 16  ;;  %s997_s14 = scalar_lea.vmem %s774_s12, 32 }
0x13e2   :  { %v898_v57 = vpop.f32.mrf.mxu0  ;;  %p994_p5 = scmp.ne.s32.totalorder %s774_s12, %s993_s13  ;;  %p998_p6 = scmp.lt.s32.totalorder %s774_s12, %s774_s12 }
0x13e3   :  { %967 = vpow2.f32 %v800_v59  ;;  %p999_p7 = scmp.lt.s32.totalorder %s997_s14, %s993_s13 }
0x13e5   :  { %p1000_p8 = por %p999_p7, %p998_p6 }
0x13e7   :  { %p1001_p9 = pnand %p1000_p8, %p994_p5 }
0x13ee   :  { %v966_v58 = vpop.eup %965 }
0x13ef   :  { %724 = vrot.lane.b32.xlu0 %v966_v58, %s1021_s8 }
0x13f0   :  { %v968_v60 = vpop.eup %967 }
0x13f1   :  { %v715_v61 = vadd.f32 1.0, %v968_v60 }
0x13f3   :  { %969 = vrcp.f32 %v715_v61 }
0x1400   :  { %v970_v62 = vpop.eup %969 }
0x1401   :  { %v722_v3 = vmul.f32 %v970_v62, %v720_v2 }
0x1461   :  { %v725_v63 = vpop.permute.xlu0 %724 }
0x1462   :  { %v727_v0 = vmul.f32 %v970_v62, %v725_v63 }
0x1464   :  { %729 = vrot.lane.b32.xlu1 %v727_v0, %s1022_s3 }
0x1468   :  { %745 = vrot.lane.b32.xlu1 %v801_v11, %s1023_s11 }
0x14d6   :  { %v730_v5 = vpop.permute.xlu1 %729 }
0x14d7   :  { %v732_v6 = vadd.f32 %v730_v5, %v722_v3 }
0x14d9   :  { %971 = vtanh.f32 %v732_v6 }
0x14da   :  { %v746_v10 = vpop.permute.xlu1 %745 }
0x14e6   :  { %v972_v8 = vpop.eup %971 }
0x14e7   :  { %735 = vrot.lane.b32.xlu0 %v972_v8, %s1021_s8 }
0x1559   :  { %v736_v9 = vpop.permute.xlu0 %735 }
0x155a   :  { %v738_v12 = vmul.f32 %v970_v62, %v736_v9 }
0x155c   :  { %v748_v13 = vmul.f32 %v746_v10, %v738_v12 }
0x155e   :  { %750 = vrot.lane.b32.xlu0 %v748_v13, %s1022_s3 }
0x15d0   :  { %v751_v14 = vpop.permute.xlu0 %750 }
0x15d1   :  { %v754_v15 = vsel %vm753_vm4, %v751_v14, 0.0 }
0x15d2   :  { %755 = vadd.xlane.f32.xlu1 %v754_v15 }
0x165b   :  { %v756_v16 = vpop.xlane.xlu1 %755 }
0x165c   :  { %v764_v17 = vadd.f32 %v802_v4, %v756_v16 }
0x165e   :  { %766 = vst.msk [vmem:[#allocation6 - $0x7] sm:$0x80] %vm765_vm5, %v764_v17 }
0x165f   :  { %1004 = shalt.err (!%p1001_p9)
}
0x1660   :  { %776 = dma.vmem_to_hbm [thread:$0]  %s774_s12, 16, %s1194_s6, [#allocation5]  }
0x1661   :  { %1015 = dma.done.wait [#allocation5], 16  }
0x1662   :  { %1016 = vsyncadd [#allocation5], 4294967280 }
0x1663   :  { %780 = vsyncpa [#allocation4], 1 }
0x1664   :  { %781 = vsyncpa [#allocation5], 1 }

</bundles_post_ra>
